<compile_context>
chip_gen: v6e
topology: v6e:2x2x1
jax: 0.10.0
libtpu: 0.0.40
codegen_flags: <defaults>
</compile_context>

<pallas_src>
from math import sqrt
from functools import partial

import jax
import jax.numpy as jnp
from jax.experimental import pallas as pl
from jax.experimental.pallas import tpu as pltpu

# ----------------------------- configuration --------------------------------
INPUT_DIMS = (4, 8)      # I0, I1  -> in_features  = 32
OUTPUT_DIMS = (4, 8)     # O0, O1  -> out_features = 32
RANK = 4                 # TT ranks: [1, RANK, 1]
IN_FEATURES = INPUT_DIMS[0] * INPUT_DIMS[1]
OUT_FEATURES = OUTPUT_DIMS[0] * OUTPUT_DIMS[1]

PACK = 128 // IN_FEATURES          # 4 original rows packed per 128-lane row
LANE = PACK * IN_FEATURES          # 128 (lane-dense last dim)
ROW_TILE_MAX = 4096                # packed rows per grid step (2 MiB f32 block)


def _round_up(n, m):
    return ((n + m - 1) // m) * m


# ------------------------------ Pallas kernel -------------------------------
def ttm_linear_kernel(x_ref, w_ref, b_ref, o_ref):
    """One lane-dense tile:  y = x @ W_block + bias.

    x_ref : (row_tile, 128)   4 packed activation rows per 128-lane row
    w_ref : (128, 128) f32    block_diag(W, W, W, W), W reconstructed from TT cores
    b_ref : (1, 128)   f32    bias tiled PACK times
    o_ref : (row_tile, 128)   packed output tile
    """
    x = x_ref[...].astype(jnp.float32)   # no-op for f32; promotes bf16 activations
    y = jnp.dot(x, w_ref[...], preferred_element_type=jnp.float32)
    o_ref[...] = (y + b_ref[...]).astype(o_ref.dtype)


# --------------------- x-independent parameter glue --------------------------
def prepare_ttm_params(core0, core1, bias):
    """Build the lane-dense weight/bias once (hoisted out of the forward path).

      W[(i0,i1),(o0,o1)] = sum_r core0[0,i0,o0,r] * core1[r,i1,o1,0]
    """
    w = jnp.einsum('ipr,rjq->ijpq', core0[0], core1[..., 0]).reshape(
        IN_FEATURES, OUT_FEATURES).astype(jnp.float32)
    w_block = jnp.kron(jnp.eye(PACK, dtype=jnp.float32), w)                 # (128,128)
    b_block = jnp.tile(bias.reshape(1, OUT_FEATURES).astype(jnp.float32),
                       (1, PACK))                                           # (1,128)
    return w_block, b_block


# ------------------------------ forward wrapper ------------------------------
@partial(jax.jit, static_argnames=("activation_dtype",))
def ttm_linear_forward(x, w_block, b_block, activation_dtype=None):
    """y = x @ W + bias with W given as the precomputed 128x128 block weight.

    activation_dtype: optionally "bfloat16" to halve x/y HBM traffic; W stays
    f32 in VMEM so no weight quantization.
    """
    batch_shape = x.shape[:-1]
    act_dtype = x.dtype if activation_dtype is None else jnp.dtype(activation_dtype)
    xf = x.reshape(-1, IN_FEATURES).astype(act_dtype)
    n_rows = xf.shape[0]

    # Pad only to a multiple of PACK (<= 3 rows) so the 128-lane packing view
    # is valid.  No pad-to-tile-multiple: partial final grid block is masked.
    pad_rows = (-n_rows) % PACK
    if pad_rows:
        xf = jnp.pad(xf, ((0, pad_rows), (0, 0)))
    n_pack = (n_rows + pad_rows) // PACK
    xp = xf.reshape(n_pack, LANE)            # free: row-major contiguous view

    # Tile selection: large tiles to amortize per-step overhead, but aim for
    # >= 2 grid steps so v7x's two TensorCores both get work.
    target = _round_up(pl.cdiv(n_pack, 2), 8)
    row_tile = min(ROW_TILE_MAX, target)
    if row_tile >= n_pack:
        row_tile = n_pack                    # single full block (block == array)
    grid = (pl.cdiv(n_pack, row_tile),)

    out = pl.pallas_call(
        ttm_linear_kernel,
        out_shape=jax.ShapeDtypeStruct((n_pack, LANE), act_dtype),
        grid=grid,
        in_specs=[
            pl.BlockSpec((row_tile, LANE), lambda i: (i, 0)),
            pl.BlockSpec((LANE, LANE), lambda i: (0, 0)),
            pl.BlockSpec((1, LANE), lambda i: (0, 0)),
        ],
        out_specs=pl.BlockSpec((row_tile, LANE), lambda i: (i, 0)),
        compiler_params=pltpu.CompilerParams(
            dimension_semantics=("parallel",)),
    )(xp, w_block, b_block)

    y = out.reshape(n_pack * PACK, OUT_FEATURES)
    if pad_rows:
        y = y[:n_rows]
    return y.reshape(*batch_shape, OUT_FEATURES)


# ---------------------- deterministic parameter setup ------------------------
def ttm_from_matrix(w, input_dims, output_dims, rank):
    """TT-matrix (2-core) decomposition of a dense (in, out) matrix (== from_matrix)."""
    i0, i1 = input_dims
    o0, o1 = output_dims
    t = w.reshape(i0, i1, o0, o1).transpose(0, 2, 1, 3).reshape(i0 * o0, i1 * o1)
    u, s, vt = jnp.linalg.svd(t, full_matrices=False)
    r = min(rank, s.shape[0])
    core0 = u[:, :r].reshape(1, i0, o0, r)
    core1 = (s[:r, None] * vt[:r, :]).reshape(r, i1, o1, 1)
    return core0, core1


def init_params(key):
    """Mirror RiemannianTTMLinear.__init__: uniform(-1,1)/sqrt(dim) init, then TT cores."""
    k_w, k_b = jax.random.split(key)
    w = (2.0 * jax.random.uniform(k_w, (IN_FEATURES, OUT_FEATURES), jnp.float32) - 1.0) \
        / sqrt(IN_FEATURES)
    bias = (2.0 * jax.random.uniform(k_b, (OUT_FEATURES,), jnp.float32) - 1.0) \
        / sqrt(OUT_FEATURES)
    core0, core1 = ttm_from_matrix(w, INPUT_DIMS, OUTPUT_DIMS, RANK)
    return core0, core1, bias


def reference_forward(x, core0, core1, bias):
    """Pure-JAX reference: reconstruct W from TT cores, y = x @ W + bias."""
    w = jnp.einsum('ipr,rjq->ijpq', core0[0], core1[..., 0]).reshape(
        IN_FEATURES, OUT_FEATURES)
    y = x.reshape(-1, IN_FEATURES) @ w + bias
    return y.reshape(*x.shape[:-1], OUT_FEATURES)


# ---------------------------------- main -------------------------------------
if __name__ == "__main__":
    key = jax.random.PRNGKey(0)
    k_params, k_x = jax.random.split(key)

    core0, core1, bias = init_params(k_params)          # (1,4,4,4), (4,8,8,1), (32,)
    x = jax.random.normal(k_x, (2, 8, IN_FEATURES), jnp.float32)   # (batch, seq, in)

    w_block, b_block = prepare_ttm_params(core0, core1, bias)  # hoisted, reused per call
    y = ttm_linear_forward(x, w_block, b_block)
    y = jax.block_until_ready(y)

    y_ref = reference_forward(x, core0, core1, bias)
    assert y.shape == (2, 8, OUT_FEATURES)
    assert jnp.allclose(y, y_ref, atol=1e-4, rtol=1e-4), "mismatch vs reference"

    print("KERNEL_OK")
</pallas_src>

<mosaic_0001>
module attributes {stable_mosaic.version = 11 : i64} {
  func.func @ttm_linear_kernel(%arg0: i32, %arg1: memref<4x128xf32, #tpu.memory_space<vmem>>, %arg2: memref<128x128xf32, #tpu.memory_space<vmem>>, %arg3: memref<1x128xf32, #tpu.memory_space<vmem>>, %arg4: memref<4x128xf32, #tpu.memory_space<vmem>>) attributes {dimension_semantics = [#tpu.dimension_semantics<parallel>], iteration_bounds = array<i64: 1>, scalar_prefetch = 0 : i64, scratch_operands = 0 : i64, tpu.core_type = #tpu.core_type<tc>, window_params = [{transform_indices = @transform_0, window_bounds = array<i64: 4, 128>}, {pipeline_mode = #tpu.pipeline_mode<synchronous>, transform_indices = @transform_1, window_bounds = array<i64: 128, 128>}, {pipeline_mode = #tpu.pipeline_mode<synchronous>, transform_indices = @transform_2, window_bounds = array<i64: 1, 128>}, {transform_indices = @transform_3, window_bounds = array<i64: 4, 128>}]} {
    %c0 = arith.constant 0 : index
    %c0_0 = arith.constant 0 : index
    %0 = vector.load %arg1[%c0, %c0_0] : memref<4x128xf32, #tpu.memory_space<vmem>>, vector<4x128xf32>
    %c0_1 = arith.constant 0 : index
    %c0_2 = arith.constant 0 : index
    %1 = vector.load %arg2[%c0_1, %c0_2] : memref<128x128xf32, #tpu.memory_space<vmem>>, vector<128x128xf32>
    %cst = arith.constant dense<0.000000e+00> : vector<4x128xf32>
    %2 = tpu.matmul %0, %1, %cst {dimension_numbers = #tpu.dot_dimension_numbers<[1], [0], [0], [1], [0, 0, 1, 1], [], []>} : vector<4x128xf32>, vector<128x128xf32>, vector<4x128xf32> -> vector<4x128xf32>
    %c0_3 = arith.constant 0 : index
    %c0_4 = arith.constant 0 : index
    %3 = vector.load %arg3[%c0_3, %c0_4] : memref<1x128xf32, #tpu.memory_space<vmem>>, vector<1x128xf32>
    %4 = vector.broadcast %3 : vector<1x128xf32> to vector<4x128xf32>
    %5 = arith.addf %2, %4 : vector<4x128xf32>
    %c0_5 = arith.constant 0 : index
    %c0_6 = arith.constant 0 : index
    %6 = vector.load %arg4[%c0_5, %c0_6] : memref<4x128xf32, #tpu.memory_space<vmem>>, vector<4x128xf32>
    tpu.vector_store %arg4[%c0_5, %c0_6], %5 {strides = array<i32>} : memref<4x128xf32, #tpu.memory_space<vmem>>, vector<4x128xf32>,
    return
  }
  func.func @transform_0(%arg0: i32) -> (i32, i32) {
    %c0_i32 = arith.constant 0 : i32
    %c0_i32_0 = arith.constant 0 : i32
    return %arg0, %c0_i32 : i32, i32
  }
  func.func @transform_1(%arg0: i32) -> (i32, i32) {
    %c0_i32 = arith.constant 0 : i32
    %c0_i32_0 = arith.constant 0 : i32
    %c0_i32_1 = arith.constant 0 : i32
    return %c0_i32, %c0_i32_0 : i32, i32
  }
  func.func @transform_2(%arg0: i32) -> (i32, i32) {
    %c0_i32 = arith.constant 0 : i32
    %c0_i32_0 = arith.constant 0 : i32
    %c0_i32_1 = arith.constant 0 : i32
    return %c0_i32, %c0_i32_0 : i32, i32
  }
  func.func @transform_3(%arg0: i32) -> (i32, i32) {
    %c0_i32 = arith.constant 0 : i32
    %c0_i32_0 = arith.constant 0 : i32
    return %arg0, %c0_i32 : i32, i32
  }
}

</mosaic_0001>

<bundles_post_ra>
// kernel: ttm_linear_forward.1
= control target key start
LH: loop header
LB: loop body
LE: loop exit
PB: predicated region body
PF: predicated region fallthrough
CT: control target
= control target key end

     0   :  { %8 = vsyncpa [#allocation3], 0  ;;  %s208_s12 = smov [#allocation2]   ;;  %s245_s0 = inlined_call_operand.vmem [shape: f32[4,128], index: 0, kind: input, shape index: {}]   ;;  %s246_s1 = inlined_call_operand.hbm [shape: f32[128,128], index: 1, kind: input, shape index: {}]   ;;  %s247_s2 = inlined_call_operand.vmem [shape: f32[1,128], index: 2, kind: input, shape index: {}]   ;;  %s248_s3 = inlined_call_operand.vmem [shape: f32[4,128], index: 3, kind: output, shape index: {}]  }
   0x1   :  { %s16_s13 = sshll.u32 %s208_s12, 4  ;;  %s17_s13 = int_to_ptr.vmem [resolvable:$true] %s16_s13 }
   0x2   :  { %s194_s14 = scalar_lea.vmem %s17_s13, 2048  ;;  %p199_p1 = scmp.lt.s32.totalorder %s17_s13, %s17_s13 }
   0x3   :  { %p195_p0 = scmp.ne.s32.totalorder %s17_s13, %s194_s14  ;;  %p200_p2 = scmp.lt.s32.totalorder %s194_s14, %s194_s14 }
   0x5   :  { %p201_p3 = por %p200_p2, %p199_p1 }
   0x7   :  { %p202_p4 = pnand %p201_p3, %p195_p0 }
   0x9   :  { %205 = shalt.err (!%p202_p4)
}
   0xa   :  { %s209_s15 = smov 128   ;;  %s210_s16 = smov 8  }
   0xb   :  { %22 = dma.hbm_to_vmem [thread:$0]  %s246_s1, 2048, %s17_s13, [#allocation3], %s209_s15, %s209_s15, %s210_s16  }
   0xc   :  { %206 = dma.done.wait [#allocation3], 2048  }
   0xd   :  { %207 = vsyncadd [#allocation3], 4294965248  ;;  %v211_v0 = vmov 0.0   ;;  %vm212_vm0 = vmmov 0   ;;  %v44_v1 = vld [vmem:[#allocation2 + $0x78] sm:$0xff]  ;;  %v43_v2 = vld [vmem:[#allocation2 + $0x70] sm:$0xff] }
   0xe   :  { %146 = vmatprep.subr.mxu0 %v211_v0  ;;  %178 = vmatprep.mubr.msk.f32.mxu0 %vm212_vm0, %v211_v0  ;;  %v42_v3 = vld [vmem:[#allocation2 + $0x68] sm:$0xff]  ;;  %v41_v4 = vld [vmem:[#allocation2 + $0x60] sm:$0xff]  ;;  %v40_v5 = vld [vmem:[#allocation2 + $0x58] sm:$0xff] }
   0xf   :  { %147 = vmatpush3.msra.mxu0 %v44_v1  ;;  %v39_v6 = vld [vmem:[#allocation2 + $0x50] sm:$0xff]  ;;  %v38_v7 = vld [vmem:[#allocation2 + $0x48] sm:$0xff]  ;;  %v37_v8 = vld [vmem:[#allocation2 + $0x40] sm:$0xff] }
  0x10   :  { %148 = vmatprep.subr.mxu0 %v211_v0  ;;  %v36_v9 = vld [vmem:[#allocation2 + $0x38] sm:$0xff]  ;;  %v35_v10 = vld [vmem:[#allocation2 + $0x30] sm:$0xff]  ;;  %v34_v11 = vld [vmem:[#allocation2 + $0x28] sm:$0xff] }
  0x11   :  { %149 = vmatpush3.msra.mxu0 %v43_v2  ;;  %v33_v12 = vld [vmem:[#allocation2 + $0x20] sm:$0xff]  ;;  %v32_v13 = vld [vmem:[#allocation2 + $0x18] sm:$0xff]  ;;  %v31_v14 = vld [vmem:[#allocation2 + $0x10] sm:$0xff] }
  0x12   :  { %150 = vmatprep.subr.mxu0 %v211_v0  ;;  %v30_v15 = vld [vmem:[#allocation2 + $0x8] sm:$0xff]  ;;  %v29_v16 = vld [vmem:[#allocation2] sm:$0xff] }
  0x13   :  { %151 = vmatpush3.msra.mxu0 %v42_v3  ;;  %v28_v17 = vld [vmem:[%s245_s0] sm:$0xf] }
  0x14   :  { %152 = vmatprep.subr.mxu0 %v211_v0  ;;  %v128_v18 = vld [vmem:[%s247_s2] ss:$0 sm:$0xff] }
  0x15   :  { %153 = vmatpush3.msra.mxu0 %v41_v4 }
  0x16   :  { %154 = vmatprep.subr.mxu0 %v211_v0 }
  0x17   :  { %155 = vmatpush3.msra.mxu0 %v40_v5 }
  0x18   :  { %156 = vmatprep.subr.mxu0 %v211_v0 }
  0x19   :  { %157 = vmatpush3.msra.mxu0 %v39_v6 }
  0x1a   :  { %158 = vmatprep.subr.mxu0 %v211_v0 }
  0x1b   :  { %159 = vmatpush3.msra.mxu0 %v38_v7 }
  0x1c   :  { %160 = vmatprep.subr.mxu0 %v211_v0 }
  0x1d   :  { %161 = vmatpush3.msra.mxu0 %v37_v8 }
  0x1e   :  { %162 = vmatprep.subr.mxu0 %v211_v0 }
  0x1f   :  { %163 = vmatpush3.msra.mxu0 %v36_v9 }
  0x20   :  { %164 = vmatprep.subr.mxu0 %v211_v0 }
  0x21   :  { %165 = vmatpush3.msra.mxu0 %v35_v10 }
  0x22   :  { %166 = vmatprep.subr.mxu0 %v211_v0 }
  0x23   :  { %167 = vmatpush3.msra.mxu0 %v34_v11 }
  0x24   :  { %168 = vmatprep.subr.mxu0 %v211_v0 }
  0x25   :  { %169 = vmatpush3.msra.mxu0 %v33_v12 }
  0x26   :  { %170 = vmatprep.subr.mxu0 %v211_v0 }
  0x27   :  { %171 = vmatpush3.msra.mxu0 %v32_v13 }
  0x28   :  { %172 = vmatprep.subr.mxu0 %v211_v0 }
  0x29   :  { %173 = vmatpush3.msra.mxu0 %v31_v14 }
  0x2a   :  { %174 = vmatprep.subr.mxu0 %v211_v0 }
  0x2b   :  { %175 = vmatpush3.msra.mxu0 %v30_v15 }
  0x2c   :  { %176 = vmatprep.subr.mxu0 %v211_v0 }
  0x2d   :  { %177 = vmatpush3.msra.mxu0 %v29_v16 }
  0x2e   :  { %179 = vmatmul.mubr.f32.vlgmr.msra.gmra.mxu0 %v28_v17 }
  0xee   :  { %v118_v19 = vpop.f32.mrf.mxu0 }
  0xef   :  { %v119_v20 = vadd.f32 %v128_v18, %v118_v19 }
  0xf0   :  { %v180_v21 = vpop.f32.mrf.mxu0 }
  0xf1   :  { %122 = vst [vmem:[%s248_s3] sm:$0xf] %v119_v20 }
  0xf2   :  { %127 = vsyncpa [#allocation3], 1 }

</bundles_post_ra>
